<compile_context>
chip_gen: v7x
topology: tpu7x:2x2x1
jax: 0.10.0
libtpu: 0.0.40
codegen_flags: <defaults>
</compile_context>

<pallas_src>
import functools
import math

import jax
import jax.numpy as jnp
from jax.experimental import pallas as pl
from jax.experimental.pallas import tpu as pltpu


_MIB = 1024 * 1024
_POOL_BLOCK_BUDGET = 8 * _MIB     # streamed x tile in the pooling pass
_SCALE_BLOCK_BUDGET = 4 * _MIB    # streamed x/out tile in the scale pass


def _vmem_limit_bytes():
    """Per-generation scoped VMEM: ~44 MiB on v7x (64 MiB phys), 96 MiB on v5e/v6e (128 MiB)."""
    try:
        cap = int(pltpu.get_tpu_info().vmem_capacity_bytes)
    except Exception:
        cap = 64 * _MIB                                   # conservative (v7x-sized) fallback
    return int(max(32 * _MIB, min(cap - 20 * _MIB, 96 * _MIB)))


def _pick_tile_l(L, C, itemsize, budget_bytes):
    """Largest lane-dense tile along L with a (C, tL) slab under budget.

    Prefers a 128-multiple divisor of L (no masked edge tile) when a big enough one exists.
    """
    if C * L * itemsize <= budget_bytes or L < 128:
        return L                                          # full-dim block: no (8,128) constraint
    max_tl = (budget_bytes // (C * itemsize)) // 128 * 128
    max_tl = max(128, min(max_tl, (L // 128) * 128))
    if L % 128 == 0:
        n128 = L // 128
        d = min(n128, max_tl // 128)
        while d > 0 and n128 % d:
            d -= 1
        if d * 128 * 2 >= max_tl:                         # divisor tile close to the budget tile
            return d * 128
    return max_tl


def _attention_math(p_col, cm, cm_t, fw_t, fb_row, w_scalar):
    """p_col: (C, 1) channel means -> gate column (C, 1). Pure f32 VPU/XLU math."""
    x1_row = jnp.sum(cm_t * p_col, axis=0, keepdims=True)             # (1, C)  conv1(p)
    x2_row = jnp.sum(fw_t * p_col, axis=0, keepdims=True) + fb_row    # (1, C)  fc(p)
    s1 = jnp.sum(x1_row, axis=1, keepdims=True)                       # (1, 1)
    s2 = jnp.sum(x2_row, axis=1, keepdims=True)
    out1 = jax.nn.sigmoid(s1 * x2_row)                                # rank-1 reduced matmul+sum
    out2 = jax.nn.sigmoid(s2 * x1_row)
    mixf = jax.nn.sigmoid(w_scalar)                                   # Mix: sigmoid(w)
    mixed = out2 + (out1 - out2) * mixf                               # == out1*m + out2*(1-m)
    return jax.nn.sigmoid(jnp.sum(cm * mixed, axis=1, keepdims=True))  # (C, 1) second conv1 + sigmoid


# ----------------------- fused single-pass kernel (slab fits VMEM) -----------------------
def _fused_kernel(x_ref, cm_ref, cmt_ref, fwt_ref, fb_ref, w_ref, o_ref, *, inv_l):
    blk = x_ref[...]                                                   # (1, C, L), L on lanes
    p_col = jnp.sum(blk.astype(jnp.float32), axis=2, keepdims=True)[0] * inv_l   # (C, 1)
    g_col = _attention_math(p_col, cm_ref[...], cmt_ref[...], fwt_ref[...],
                            fb_ref[...], w_ref[0])
    o_ref[...] = (blk.astype(jnp.float32) * g_col[None, :, :]).astype(o_ref.dtype)


# -------------------- streaming fallback: kernel 1 (pool + attention) --------------------
def _pool_attn_kernel(x_ref, cm_ref, cmt_ref, fwt_ref, fb_ref, w_ref, gate_ref, acc_ref,
                      *, inv_l, L, tl, n_l, needs_mask):
    li = pl.program_id(1)
    last = n_l - 1

    @pl.when(li == 0)
    def _init():
        acc_ref[...] = jnp.zeros_like(acc_ref)

    if needs_mask:
        # Mask only on the final (partial) tile; all other steps are pure vld + vadd.
        @pl.when(li < last)
        def _acc_full():
            acc_ref[...] += x_ref[...].astype(jnp.float32)

        @pl.when(li == last)
        def _acc_edge():
            blk = x_ref[...].astype(jnp.float32)
            col = jax.lax.broadcasted_iota(jnp.int32, blk.shape, 2) + last * tl
            acc_ref[...] += jnp.where(col < L, blk, 0.0)
    else:
        acc_ref[...] += x_ref[...].astype(jnp.float32)

    @pl.when(li == last)
    def _finalize():
        # One cross-lane reduce of the lane-wide accumulator, once per batch element.
        p_col = jnp.sum(acc_ref[0], axis=1, keepdims=True) * inv_l     # (C, 1)
        g_col = _attention_math(p_col, cm_ref[...], cmt_ref[...], fwt_ref[...],
                                fb_ref[...], w_ref[0])
        gate_ref[0] = g_col.astype(gate_ref.dtype)


# ------------------------ streaming fallback: kernel 2 (x * gate) ------------------------
def _scale_kernel(x_ref, g_ref, o_ref):
    o_ref[...] = x_ref[...] * g_ref[...]                               # (1, C, tl) * (1, C, 1)


def fca_forward(x, conv1_w, fc_w, fc_b, mix_w, *, force_streaming=False, stream_tile_l=None):
    """FCA forward.

    x:       (N, C, L) float32   (L = flattened spatial, e.g. H*W)
    conv1_w: (k,)      float32   == torch conv1.weight[0, 0, :]  (k odd, no bias)
    fc_w:    (C, C)    float32   == torch fc.weight[:, :, 0]
    fc_b:    (C,)      float32   == torch fc.bias
    mix_w:   (1,)      float32   == torch mix.w  (init -0.8)
    """
    N, C, L = x.shape
    conv1_w = jnp.reshape(conv1_w, (-1,)).astype(jnp.float32)
    k = conv1_w.shape[0]
    pad = k // 2
    fc_w = jnp.reshape(fc_w, (C, C)).astype(jnp.float32)
    fc_b_row = jnp.reshape(fc_b, (1, C)).astype(jnp.float32)
    mix_w = jnp.reshape(mix_w, (1,)).astype(jnp.float32)

    # Channel conv ('same' zero padding, cross-correlation) as a (C, C) band matrix:
    #   cm[o, i] = conv1_w[i - o + pad]  if 0 <= i - o + pad < k  else 0
    # TODO(synk): for very large C, replace the dense band matrix with shifted adds
    # (pltpu.roll) and tile the channel axis; the dense form is fine for CNN-sized C.
    ch = jnp.arange(C)
    d = ch[None, :] - ch[:, None] + pad
    cm = jnp.where((d >= 0) & (d < k), conv1_w[jnp.clip(d, 0, k - 1)], 0.0).astype(jnp.float32)
    cm_t = cm.T                     # (i, o): matvec result lands on lanes
    fc_w_t = fc_w.T                 # (i, o)

    itemsize = jnp.dtype(x.dtype).itemsize
    inv_l = 1.0 / float(L)
    vmem_limit = _vmem_limit_bytes()
    slab_bytes = C * L * itemsize
    const_bytes = (3 * C * C + 2 * C) * 4
    attn_flops = 4 * C * C + 12 * C
    attn_transc = 3 * C + 1

    const_specs = [
        pl.BlockSpec(memory_space=pltpu.MemorySpace.VMEM),   # cm   (C, C) — whole array, single buffer
        pl.BlockSpec(memory_space=pltpu.MemorySpace.VMEM),   # cm_t (C, C)
        pl.BlockSpec(memory_space=pltpu.MemorySpace.VMEM),   # fc_w_t (C, C)
        pl.BlockSpec(memory_space=pltpu.MemorySpace.VMEM),   # fc_b (1, C)
        pl.BlockSpec(memory_space=pltpu.MemorySpace.SMEM),   # mix scalar
    ]

    # ---------------- fused fast path: whole per-batch slab resident in VMEM ----------------
    fused_fits = (4 * slab_bytes + const_bytes + 2 * _MIB) <= vmem_limit
    if fused_fits and not force_streaming:
        return pl.pallas_call(
            functools.partial(_fused_kernel, inv_l=inv_l),
            out_shape=jax.ShapeDtypeStruct((N, C, L), x.dtype),
            grid=(N,),
            in_specs=[pl.BlockSpec((1, C, L), lambda n: (n, 0, 0))] + const_specs,
            out_specs=pl.BlockSpec((1, C, L), lambda n: (n, 0, 0)),
            compiler_params=pltpu.CompilerParams(
                dimension_semantics=("parallel",),
                vmem_limit_bytes=vmem_limit,
            ),
            cost_estimate=pl.CostEstimate(
                flops=2 * N * C * L + N * attn_flops,
                transcendentals=N * attn_transc,
                bytes_accessed=2 * N * slab_bytes + const_bytes,
            ),
        )(x, cm, cm_t, fc_w_t, fc_b_row, mix_w)

    # --------------------------- streaming fallback (large slabs) ---------------------------
    tl1 = _pick_tile_l(L, C, itemsize, _POOL_BLOCK_BUDGET) if stream_tile_l is None else int(stream_tile_l)
    tl2 = _pick_tile_l(L, C, itemsize, _SCALE_BLOCK_BUDGET) if stream_tile_l is None else int(stream_tile_l)
    n_l1 = pl.cdiv(L, tl1)
    n_l2 = pl.cdiv(L, tl2)
    needs_mask = (L % tl1) != 0

    # Kernel 1: global-avg-pool + channel attention + Mix -> gate (N, C, 1)
    # TODO(synk): for N == 1 on v7x, split L over a second "parallel" grid axis with per-core
    # partial sums so both TensorCores stream HBM in this pass.
    gate = pl.pallas_call(
        functools.partial(_pool_attn_kernel, inv_l=inv_l, L=L, tl=tl1, n_l=n_l1,
                          needs_mask=needs_mask),
        out_shape=jax.ShapeDtypeStruct((N, C, 1), x.dtype),
        grid=(N, n_l1),
        in_specs=[pl.BlockSpec((1, C, tl1), lambda n, l: (n, 0, l))] + const_specs,
        out_specs=pl.BlockSpec((1, C, 1), lambda n, l: (n, 0, 0)),
        scratch_shapes=[pltpu.VMEM((1, C, tl1), jnp.float32)],          # lane-wide accumulator
        compiler_params=pltpu.CompilerParams(
            dimension_semantics=("parallel", "arbitrary"),
            vmem_limit_bytes=vmem_limit,
        ),
        cost_estimate=pl.CostEstimate(
            flops=N * C * L + N * attn_flops,
            transcendentals=N * attn_transc,
            bytes_accessed=N * slab_bytes + N * C * itemsize + const_bytes,
        ),
    )(x, cm, cm_t, fc_w_t, fc_b_row, mix_w)

    # Kernel 2: out = input * gate (pure HBM bandwidth, both grid axes parallel)
    return pl.pallas_call(
        _scale_kernel,
        out_shape=jax.ShapeDtypeStruct((N, C, L), x.dtype),
        grid=(N, n_l2),
        in_specs=[
            pl.BlockSpec((1, C, tl2), lambda n, l: (n, 0, l)),
            pl.BlockSpec((1, C, 1), lambda n, l: (n, 0, 0)),
        ],
        out_specs=pl.BlockSpec((1, C, tl2), lambda n, l: (n, 0, l)),
        compiler_params=pltpu.CompilerParams(
            dimension_semantics=("parallel", "parallel"),
            vmem_limit_bytes=vmem_limit,
        ),
        cost_estimate=pl.CostEstimate(
            flops=N * C * L,
            transcendentals=0,
            bytes_accessed=2 * N * slab_bytes + N * C * itemsize,
        ),
    )(x, gate)


def _fca_reference(x, conv1_w, fc_w, fc_b, mix_w):
    """Plain-JAX mirror of the PyTorch FCA.forward (checking only)."""
    N, C, L = x.shape
    conv1_w = jnp.reshape(conv1_w, (-1,))
    k = conv1_w.shape[0]
    pad = k // 2

    def conv_ch(v):                                   # 'same' conv over the channel axis
        vp = jnp.pad(v, ((0, 0), (pad, pad)))
        return sum(conv1_w[j] * vp[:, j:j + C] for j in range(k))

    p = jnp.mean(x, axis=2)                                           # avg_pool
    x1 = conv_ch(p)                                                   # conv1
    x2 = jnp.sum(fc_w[None] * p[:, None, :], axis=2) + fc_b[None, :]  # fc (1x1 conv)
    out1 = jax.nn.sigmoid(jnp.sum(x1, axis=1, keepdims=True) * x2)
    out2 = jax.nn.sigmoid(jnp.sum(x2, axis=1, keepdims=True) * x1)
    m = jax.nn.sigmoid(mix_w[0])
    mixed = out1 * m + out2 * (1.0 - m)                               # Mix
    gate = jax.nn.sigmoid(conv_ch(mixed))
    return x * gate[:, :, None]


if __name__ == "__main__":
    key = jax.random.PRNGKey(0)
    kx, kc, kw, kb, kx2 = jax.random.split(key, 5)

    # Small shapes: batch=2, channels=16, spatial 16x16 flattened -> L=256.
    N, C, L = 2, 16, 256
    t = int(abs((math.log(C, 2) + 1) / 2))            # same kernel-size rule as the PyTorch module
    k = t if t % 2 else t + 1                         # -> k = 3 for C = 16

    x = jax.random.normal(kx, (N, C, L), dtype=jnp.float32)
    conv1_w = 0.5 * jax.random.normal(kc, (k,), dtype=jnp.float32)
    fc_w = jax.random.normal(kw, (C, C), dtype=jnp.float32) / math.sqrt(C)
    fc_b = 0.1 * jax.random.normal(kb, (C,), dtype=jnp.float32)
    mix_w = jnp.array([-0.8], dtype=jnp.float32)      # Mix parameter init (m = -0.8)

    # 1) Fused VMEM-resident fast path (the one taken for these shapes).
    out = jax.block_until_ready(jax.jit(fca_forward)(x, conv1_w, fc_w, fc_b, mix_w))
    ref = _fca_reference(x, conv1_w, fc_w, fc_b, mix_w)
    assert out.shape == x.shape
    err = float(jnp.max(jnp.abs(out - ref)))
    assert jnp.allclose(out, ref, atol=1e-5, rtol=1e-5), f"fused path max abs err = {err}"

    # 2) Streaming fallback path, forced, with L not a multiple of the tile so the
    #    masked edge tile, multi-tile accumulation, and edge output stores are exercised.
    L2 = 320
    x2 = jax.random.normal(kx2, (N, C, L2), dtype=jnp.float32)
    stream_fn = jax.jit(functools.partial(fca_forward, force_streaming=True, stream_tile_l=128))
    out2 = jax.block_until_ready(stream_fn(x2, conv1_w, fc_w, fc_b, mix_w))
    ref2 = _fca_reference(x2, conv1_w, fc_w, fc_b, mix_w)
    err2 = float(jnp.max(jnp.abs(out2 - ref2)))
    assert jnp.allclose(out2, ref2, atol=1e-5, rtol=1e-5), f"streaming path max abs err = {err2}"

    print("KERNEL_OK")
</pallas_src>

<mosaic_0001>
module attributes {stable_mosaic.version = 11 : i64} {
  func.func @_fused_kernel(%arg0: i32, %arg1: memref<1x16x256xf32, #tpu.memory_space<vmem>>, %arg2: memref<16x16xf32, #tpu.memory_space<vmem>>, %arg3: memref<16x16xf32, #tpu.memory_space<vmem>>, %arg4: memref<16x16xf32, #tpu.memory_space<vmem>>, %arg5: memref<1x16xf32, #tpu.memory_space<vmem>>, %arg6: memref<1xf32, #tpu.memory_space<smem>>, %arg7: memref<1x16x256xf32, #tpu.memory_space<vmem>>) attributes {dimension_semantics = [#tpu.dimension_semantics<parallel>], iteration_bounds = array<i64: 2>, scalar_prefetch = 0 : i64, scratch_operands = 0 : i64, tpu.core_type = #tpu.core_type<tc>, window_params = [{transform_indices = @transform_0, window_bounds = array<i64: 1, 16, 256>}, {pipeline_mode = #tpu.pipeline_mode<synchronous>, transform_indices = @transform_1, window_bounds = array<i64: 16, 16>}, {pipeline_mode = #tpu.pipeline_mode<synchronous>, transform_indices = @transform_2, window_bounds = array<i64: 16, 16>}, {pipeline_mode = #tpu.pipeline_mode<synchronous>, transform_indices = @transform_3, window_bounds = array<i64: 16, 16>}, {pipeline_mode = #tpu.pipeline_mode<synchronous>, transform_indices = @transform_4, window_bounds = array<i64: 1, 16>}, {transform_indices = @transform_5, window_bounds = array<i64: 1>}, {transform_indices = @transform_6, window_bounds = array<i64: 1, 16, 256>}]} {
    %c0 = arith.constant 0 : index
    %c0_0 = arith.constant 0 : index
    %c0_1 = arith.constant 0 : index
    %0 = vector.load %arg1[%c0, %c0_0, %c0_1] : memref<1x16x256xf32, #tpu.memory_space<vmem>>, vector<1x16x256xf32>
    %cst = arith.constant dense<0.000000e+00> : vector<1x16xf32>
    %1 = vector.multi_reduction <add>, %0, %cst [2] : vector<1x16x256xf32> to vector<1x16xf32>
    %2 = vector.shape_cast %1 : vector<1x16xf32> to vector<1x16x1xf32>
    %3 = vector.shape_cast %2 : vector<1x16x1xf32> to vector<16x1xf32>
    %cst_2 = arith.constant 3.906250e-03 : f32
    %4 = vector.broadcast %cst_2 : f32 to vector<16x1xf32>
    %5 = arith.mulf %3, %4 : vector<16x1xf32>
    %c0_3 = arith.constant 0 : index
    %c0_4 = arith.constant 0 : index
    %6 = vector.load %arg2[%c0_3, %c0_4] : memref<16x16xf32, #tpu.memory_space<vmem>>, vector<16x16xf32>
    %c0_5 = arith.constant 0 : index
    %c0_6 = arith.constant 0 : index
    %7 = vector.load %arg3[%c0_5, %c0_6] : memref<16x16xf32, #tpu.memory_space<vmem>>, vector<16x16xf32>
    %c0_7 = arith.constant 0 : index
    %c0_8 = arith.constant 0 : index
    %8 = vector.load %arg4[%c0_7, %c0_8] : memref<16x16xf32, #tpu.memory_space<vmem>>, vector<16x16xf32>
    %c0_9 = arith.constant 0 : index
    %c0_10 = arith.constant 0 : index
    %9 = vector.load %arg5[%c0_9, %c0_10] : memref<1x16xf32, #tpu.memory_space<vmem>>, vector<1x16xf32>
    %c0_11 = arith.constant 0 : index
    %10 = memref.load %arg6[%c0_11] : memref<1xf32, #tpu.memory_space<smem>>
    %11 = vector.broadcast %5 : vector<16x1xf32> to vector<16x16xf32>
    %12 = arith.mulf %7, %11 : vector<16x16xf32>
    %cst_12 = arith.constant dense<0.000000e+00> : vector<16xf32>
    %13 = vector.multi_reduction <add>, %12, %cst_12 [0] : vector<16x16xf32> to vector<16xf32>
    %14 = vector.shape_cast %13 : vector<16xf32> to vector<1x16xf32>
    %15 = vector.broadcast %5 : vector<16x1xf32> to vector<16x16xf32>
    %16 = arith.mulf %8, %15 : vector<16x16xf32>
    %cst_13 = arith.constant dense<0.000000e+00> : vector<16xf32>
    %17 = vector.multi_reduction <add>, %16, %cst_13 [0] : vector<16x16xf32> to vector<16xf32>
    %18 = vector.shape_cast %17 : vector<16xf32> to vector<1x16xf32>
    %19 = arith.addf %18, %9 : vector<1x16xf32>
    %cst_14 = arith.constant dense<0.000000e+00> : vector<1xf32>
    %20 = vector.multi_reduction <add>, %14, %cst_14 [1] : vector<1x16xf32> to vector<1xf32>
    %21 = vector.shape_cast %20 : vector<1xf32> to vector<1x1xf32>
    %cst_15 = arith.constant dense<0.000000e+00> : vector<1xf32>
    %22 = vector.multi_reduction <add>, %19, %cst_15 [1] : vector<1x16xf32> to vector<1xf32>
    %23 = vector.shape_cast %22 : vector<1xf32> to vector<1x1xf32>
    %24 = vector.broadcast %21 : vector<1x1xf32> to vector<1x16xf32>
    %25 = arith.mulf %24, %19 : vector<1x16xf32>
    %26 = arith.negf %25 : vector<1x16xf32>
    %27 = math.exp %26 : vector<1x16xf32>
    %cst_16 = arith.constant 1.000000e+00 : f32
    %28 = vector.broadcast %cst_16 : f32 to vector<1x16xf32>
    %29 = arith.addf %28, %27 : vector<1x16xf32>
    %30 = arith.divf %28, %29 : vector<1x16xf32>
    %31 = vector.broadcast %23 : vector<1x1xf32> to vector<1x16xf32>
    %32 = arith.mulf %31, %14 : vector<1x16xf32>
    %33 = arith.negf %32 : vector<1x16xf32>
    %34 = math.exp %33 : vector<1x16xf32>
    %cst_17 = arith.constant 1.000000e+00 : f32
    %35 = vector.broadcast %cst_17 : f32 to vector<1x16xf32>
    %36 = arith.addf %35, %34 : vector<1x16xf32>
    %37 = arith.divf %35, %36 : vector<1x16xf32>
    %38 = arith.negf %10 : f32
    %39 = math.exp %38 : f32
    %cst_18 = arith.constant 1.000000e+00 : f32
    %40 = arith.addf %cst_18, %39 : f32
    %41 = arith.divf %cst_18, %40 : f32
    %42 = arith.subf %30, %37 : vector<1x16xf32>
    %43 = vector.broadcast %41 : f32 to vector<1x16xf32>
    %44 = arith.mulf %42, %43 : vector<1x16xf32>
    %45 = arith.addf %37, %44 : vector<1x16xf32>
    %46 = vector.broadcast %45 : vector<1x16xf32> to vector<16x16xf32>
    %47 = arith.mulf %6, %46 : vector<16x16xf32>
    %cst_19 = arith.constant dense<0.000000e+00> : vector<16xf32>
    %48 = vector.multi_reduction <add>, %47, %cst_19 [1] : vector<16x16xf32> to vector<16xf32>
    %49 = vector.shape_cast %48 : vector<16xf32> to vector<16x1xf32>
    %50 = arith.negf %49 : vector<16x1xf32>
    %51 = math.exp %50 : vector<16x1xf32>
    %cst_20 = arith.constant 1.000000e+00 : f32
    %52 = vector.broadcast %cst_20 : f32 to vector<16x1xf32>
    %53 = arith.addf %52, %51 : vector<16x1xf32>
    %54 = arith.divf %52, %53 : vector<16x1xf32>
    %55 = vector.shape_cast %54 : vector<16x1xf32> to vector<1x16x1xf32>
    %56 = vector.broadcast %55 : vector<1x16x1xf32> to vector<1x16x256xf32>
    %57 = arith.mulf %0, %56 : vector<1x16x256xf32>
    %c0_21 = arith.constant 0 : index
    %c0_22 = arith.constant 0 : index
    %c0_23 = arith.constant 0 : index
    %58 = vector.load %arg7[%c0_21, %c0_22, %c0_23] : memref<1x16x256xf32, #tpu.memory_space<vmem>>, vector<1x16x256xf32>
    tpu.vector_store %arg7[%c0_21, %c0_22, %c0_23], %57 {strides = array<i32>} : memref<1x16x256xf32, #tpu.memory_space<vmem>>, vector<1x16x256xf32>,
    return
  }
  func.func @transform_0(%arg0: i32) -> (i32, i32, i32) {
    %c0_i32 = arith.constant 0 : i32
    %c0_i32_0 = arith.constant 0 : i32
    %c0_i32_1 = arith.constant 0 : i32
    return %arg0, %c0_i32, %c0_i32_0 : i32, i32, i32
  }
  func.func @transform_1(%arg0: i32) -> (i32, i32) {
    %c0_i32 = arith.constant 0 : i32
    %c0_i32_0 = arith.constant 0 : i32
    %c0_i32_1 = arith.constant 0 : i32
    return %c0_i32, %c0_i32_0 : i32, i32
  }
  func.func @transform_2(%arg0: i32) -> (i32, i32) {
    %c0_i32 = arith.constant 0 : i32
    %c0_i32_0 = arith.constant 0 : i32
    %c0_i32_1 = arith.constant 0 : i32
    return %c0_i32, %c0_i32_0 : i32, i32
  }
  func.func @transform_3(%arg0: i32) -> (i32, i32) {
    %c0_i32 = arith.constant 0 : i32
    %c0_i32_0 = arith.constant 0 : i32
    %c0_i32_1 = arith.constant 0 : i32
    return %c0_i32, %c0_i32_0 : i32, i32
  }
  func.func @transform_4(%arg0: i32) -> (i32, i32) {
    %c0_i32 = arith.constant 0 : i32
    %c0_i32_0 = arith.constant 0 : i32
    %c0_i32_1 = arith.constant 0 : i32
    return %c0_i32, %c0_i32_0 : i32, i32
  }
  func.func @transform_5(%arg0: i32) -> i32 {
    %c0_i32 = arith.constant 0 : i32
    %c0_i32_0 = arith.constant 0 : i32
    return %c0_i32 : i32
  }
  func.func @transform_6(%arg0: i32) -> (i32, i32, i32) {
    %c0_i32 = arith.constant 0 : i32
    %c0_i32_0 = arith.constant 0 : i32
    %c0_i32_1 = arith.constant 0 : i32
    return %arg0, %c0_i32, %c0_i32_0 : i32, i32, i32
  }
}

</mosaic_0001>

<bundles_post_ra>
// kernel: fca_forward.1
= control target key start
LH: loop header
LB: loop body
LE: loop exit
PB: predicated region body
PF: predicated region fallthrough
CT: control target
= control target key end

     0   :  { %s772_s0 = inlined_call_operand.vmem [shape: f32[2,16,256], index: 0, kind: input, shape index: {}]   ;;  %s773_s1 = inlined_call_operand.vmem [shape: f32[16,16], index: 1, kind: input, shape index: {}]   ;;  %s774_s2 = inlined_call_operand.vmem [shape: f32[16,16], index: 2, kind: input, shape index: {}]   ;;  %s775_s3 = inlined_call_operand.vmem [shape: f32[16,16], index: 3, kind: input, shape index: {}]   ;;  %s776_s4 = inlined_call_operand.vmem [shape: f32[1,16], index: 4, kind: input, shape index: {}]   ;;  %s777_s5 = inlined_call_operand.<no memory space> [shape: f32[1], index: 5, kind: input, shape index: {}]   ;;  %s778_s6 = inlined_call_operand.hbm [shape: f32[2,16,256], index: 6, kind: output, shape index: {}]  }
   0x1   :  { %11 = sst [smem:[#allocation2]] %s777_s5 }
   0x2   :  { %12 = vsyncpa [#allocation4], 0 }
   0x3   :  { %14 = vsyncpa [#allocation4 + $0x1], 0  ;;  %s625_s23 = smov 0   ;;  %s627_s24 = smov 0  }
   0x4   :  { %s629_s25 = smov 0   ;;  %s631_s26 = smov 0  }
   0x5 LB: > { %s646_s5 = sadd.s32 4294967295, %s582_s26   ;;  %s437_s27 = sadd.s32 4294967294, %s582_s26   ;;  %s582_s26 = sphi %s631_s26, %s784_s26   ;;  %s578_s25 = sphi %s629_s25, %s783_s25   ;;  %s574_s24 = sphi %s627_s24, %s782_s24   ;;  %s570_s23 = sphi %s625_s23, %s781_s23  }
   0x6   : > { %s650_s28 = sadd.s32 1, %s582_s26   ;;  %s158_s29 = sadd.s32 1, %s578_s25 }
   0x7   : > { %s155_s30 = ssub.s32 %s582_s26, %s650_s28  ;;  %p168_p0 = scmp.ne.s32.totalorder %s578_s25, %s574_s24 }
   0x8   : > { %p156_p1 = scmp.eq.s32.totalorder %s155_s30, 0  ;;  %p169_p2 = scmp.eq.s32.totalorder %s646_s5, 1 }
   0x9   : > { %p174_p3 = scmp.ne.s32.totalorder %s574_s24, %s570_s23  ;;  %p175_p4 = scmp.eq.s32.totalorder %s437_s27, 1 }
   0xa   : > { %s661_s7 = scalar_select %p156_p1, %s578_s25, %s158_s29  }
   0xb   : > { %p663_p5 = por %p169_p2, %p168_p0  ;;  %p667_p6 = por %p175_p4, %p174_p3 }
   0xc   : > { %p440_p7 = scmp.ge.s32.totalorder %s582_s26, 1  ;;  %p216_p8 = scmp.lt.s32.totalorder %s582_s26, 3 }
   0xe   : > { %p217_p9 = pnand %p440_p7, %p216_p8 }
   0xf   : > { %p246_p10 = scmp.lt.s32.totalorder (!%p217_p9), %s646_s5, 1  ;;  %s270_s15 = sld [smem:[#allocation2]] (!%p217_p9)  ;;  %v265_v13 = vld [vmem:[%s774_s2] sm:$0xff] (!%p217_p9)  ;;  %v266_v15 = vld [vmem:[%s774_s2 + $0x8] sm:$0xff] (!%p217_p9)  ;;  %vm273_vm0 = vcmask (!%p217_p9), 130048   ;;  %vm298_vm1 = vcmask (!%p217_p9), 122880   ;;  %v329_v55 = vlaneseq (!%p217_p9) }
  0x10   : > { %220 = sbr.rel (%p217_p9) target bundleno = 567 (0x237), region = 44  ;;  %v267_v14 = vld [vmem:[%s775_s3] sm:$0xff] (!%p217_p9)  ;;  %v268_v16 = vld [vmem:[%s775_s3 + $0x8] sm:$0xff] (!%p217_p9)  ;;  %s454_s20 = sshll.u32 (!%p217_p9), %s646_s5, 9 }
  0x11   : > { %v269_v39 = vld [vmem:[%s776_s4] sm:$0x1] (!%p217_p9)  ;;  %v330_v57 = vshrl.u32 (!%p217_p9), %v329_v55, 7  ;;  %s725_s30 = scalar_lea.hbm (!%p217_p9), %s778_s6, %s454_s20 }
  0x13   : > { %v331_v62 = vsub.s32 (!%p217_p9), 0, %v330_v57 }
  0x15   : > { %s316_s16 = sxor.u32 (!%p217_p9), 2147483648, %s270_s15 }
  0x16   : > { %v317_v6 = vstv (!%p217_p9), %s316_s16 }
  0x17   : > { %s247_s10 = scalar_select %p246_p10, %s646_s5, 1  ;;  %v318_v7 = vmul.f32 1.442695, %v317_v6 }
  0x19   : > { %s453_s11 = sshll.u32 %s247_s10, 5  ;;  %500 = vpow2.f32 %v318_v7 }
  0x1a   : > { %s250_s14 = scalar_lea.vmem %s772_s0, %s453_s11  ;;  %s584_s11 = smov [#allocation3]  }
  0x1b   : > { %v678_v0 = vld [vmem:[%s250_s14] sm:$0xff]  ;;  %v680_v1 = vld [vmem:[%s250_s14 + $0x8] sm:$0xff]  ;;  %v682_v2 = vld [vmem:[%s250_s14 + $0x10] sm:$0xff]  ;;  %s524_s12 = sshll.u32 %s584_s11, 4  ;;  %s525_s12 = int_to_ptr.vmem [resolvable:$false] %s524_s12 }
  0x1c   : > { %v255_v3 = vadd.f32 %v680_v1, %v678_v0  ;;  %v686_v4 = vld [vmem:[%s250_s14 + $0x18] sm:$0xff] }
  0x1d   : > { %v258_v5 = vadd.f32 %v686_v4, %v682_v2 }
  0x1e   : > { %256 = vadd.xlane.f32.xlu0 %v255_v3  ;;  %v264_v3 = vld [vmem:[%s773_s1 + $0x8] sm:$0xff] }
  0x22   : > { %259 = vadd.xlane.f32.xlu0 %v258_v5  ;;  %v263_v5 = vld [vmem:[%s773_s1] sm:$0xff] }
  0x23   : > { %v501_v8 = vpop.eup %500 }
  0x24   : > { %455 = vpush %v501_v8 }
  0x55   : > { %s456_s17 = spop %455 }
  0x56   : > { %s321_s18 = sadd.f32 1.0, %s456_s17 }
  0x58   : > { %v322_v9 = vstv %s321_s18  ;;  %s243_s18 = sand.u32 1, %s574_s24  }
  0x59   : > { %502 = vrcp.f32 %v322_v9  ;;  %s441_s19 = sshll.u32 %s243_s18, 5  ;;  %s731_s5 = scalar_lea.sflag [#allocation4], %s243_s18 }
  0x5a   : > { %s245_s21 = scalar_lea.vmem [#allocation3], %s441_s19 }
  0x5b   : > { %s375_s22 = sshll.u32 %s245_s21, 4  ;;  %s727_s22 = int_to_ptr.vmem [resolvable:$true] %s375_s22 }
  0x5c   : > { %s520_s10 = scalar_lea.vmem %s727_s22, 512  ;;  %p527_p0 = scmp.lt.s32.totalorder %s727_s22, %s525_s12 }
  0x5d   : > { %p521_p11 = scmp.ne.s32.totalorder %s727_s22, %s520_s10 }
  0x5f   : > { %p522_p12 = pnand %p521_p11, %p663_p5 }
  0x61   : > { %p523_p13 = pneg %p522_p12 }
  0x63   : > { %v503_v10 = vpop.eup %502 }
  0x64   : > { %457 = vpush %v503_v10 }
  0x95   : > { %s458_s13 = spop %457 }
  0x96   : > { %v326_v59 = vstv %s458_s13  ;;  %s526_s13 = scalar_lea.vmem %s525_s12, 1024 }
  0x97   : > { %p528_p1 = scmp.lt.s32.totalorder %s526_s13, %s520_s10 }
  0x99   : > { %p529_p2 = por %p528_p1, %p527_p0 }
  0x9b   : > { %p530_p3 = pnand %p529_p2, %p523_p13 }
  0xab   : > { %v257_v11 = vpop.xlane.xlu0 %256 }
  0xac   : > { %v261_v12 = vmul.f32 0.00390625, %v257_v11 }
  0xae   : > { %v271_v18 = vmul.f32 %v265_v13, %v261_v12  ;;  %v283_v19 = vmul.f32 %v267_v14, %v261_v12 }
  0xaf   : > { %v260_v17 = vpop.xlane.xlu0 %259 }
  0xb0   : > { %v262_v20 = vmul.f32 0.00390625, %v260_v17  ;;  %v274_v23 = vsel %vm273_vm0, %v271_v18, 0.0  ;;  %v285_v24 = vsel %vm273_vm0, %v283_v19, 0.0 }
  0xb2   : > { %v272_v21 = vmul.f32 %v266_v15, %v262_v20  ;;  %v284_v22 = vmul.f32 %v268_v16, %v262_v20 }
  0xb4   : > { %v275_v25 = vsel %vm273_vm0, %v272_v21, 0.0  ;;  %v286_v26 = vsel %vm273_vm0, %v284_v22, 0.0 }
  0xb5   : > { %v276_v27 = vadd.f32 %v275_v25, %v274_v23  ;;  %v287_v28 = vadd.f32 %v286_v26, %v285_v24 }
  0xb7   : > { %v277_v29 = vrot.slane %v276_v27, 4  ;;  %v288_v30 = vrot.slane %v287_v28, 4 }
  0xb9   : > { %v289_v31 = vadd.f32 %v288_v30, %v287_v28  ;;  %v278_v32 = vadd.f32 %v277_v29, %v276_v27 }
  0xbb   : > { %v279_v33 = vrot.slane %v278_v32, 2  ;;  %v290_v34 = vrot.slane %v289_v31, 2 }
  0xbd   : > { %v280_v35 = vadd.f32 %v279_v33, %v278_v32  ;;  %v291_v36 = vadd.f32 %v290_v34, %v289_v31 }
  0xbf   : > { %v281_v37 = vrot.slane %v280_v35, 1  ;;  %v292_v38 = vrot.slane %v291_v36, 1 }
  0xc1   : > { %v282_v40 = vadd.f32 %v281_v37, %v280_v35  ;;  %v293_v41 = vadd.f32 %v292_v38, %v291_v36 }
  0xc3   : > { %v295_v42 = vsel %vm273_vm0, %v282_v40, 0.0  ;;  %v294_v43 = vadd.f32 %v293_v41, %v269_v39 }
  0xc4   : > { %296 = vadd.xlane.f32.xlu1 %v295_v42 }
  0xc5   : > { %v299_v44 = vsel %vm298_vm1, %v294_v43, 0.0 }
  0xc8   : > { %300 = vadd.xlane.f32.xlu1 %v299_v44 }
 0x151   : > { %v297_v45 = vpop.xlane.xlu1 %296 }
 0x152   : > { %v302_v46 = vmul.f32 %v297_v45, %v294_v43 }
 0x154   : > { %v444_v47 = vmul.f32 -1.442695, %v302_v46 }
 0x155   : > { %v301_v48 = vpop.xlane.xlu1 %300 }
 0x156   : > { %504 = vpow2.f32 %v444_v47  ;;  %v309_v49 = vmul.f32 %v301_v48, %v282_v40 }
 0x158   : > { %v445_v50 = vmul.f32 -1.442695, %v309_v49 }
 0x15a   : > { %506 = vpow2.f32 %v445_v50 }
 0x160   : > { %v505_v51 = vpop.eup %504 }
 0x161   : > { %v306_v52 = vadd.f32 1.0, %v505_v51 }
 0x163   : > { %508 = vrcp.f32 %v306_v52 }
 0x164   : > { %v507_v53 = vpop.eup %506 }
 0x165   : > { %v313_v54 = vadd.f32 1.0, %v507_v53 }
 0x167   : > { %510 = vrcp.f32 %v313_v54 }
 0x16d   : > { %v509_v56 = vpop.eup %508 }
 0x171   : > { %v511_v58 = vpop.eup %510 }
 0x172   : > { %v325_v60 = vsub.f32 %v509_v56, %v511_v58 }
 0x174   : > { %v327_v61 = vmul.f32 %v326_v59, %v325_v60 }
 0x176   : > { %v328_v63 = vadd.f32 %v511_v58, %v327_v61 }
 0x178   : > { %v332_v6 = vrot.slane %v328_v63, %v331_v62 }
 0x17a   : > { %v334_v7 = vmul.f32 %v332_v6, %v264_v3  ;;  %v333_v8 = vmul.f32 %v332_v6, %v263_v5 }
 0x17c   : > { %v338_v9 = vsel %vm273_vm0, %v334_v7, 0.0  ;;  %v335_v10 = vsel %vm273_vm0, %v333_v8, 0.0 }
 0x17d   : > { %339 = vadd.xlane.f32.xlu1 %v338_v9  ;;  %336 = vadd.xlane.f32.xlu0 %v335_v10 }
 0x20a   : > { %v340_v11 = vpop.xlane.xlu1 %339  ;;  %v337_v12 = vpop.xlane.xlu0 %336 }
 0x20b   : > { %v447_v13 = vmul.f32 -1.442695, %v340_v11  ;;  %v446_v14 = vmul.f32 -1.442695, %v337_v12 }
 0x20d   : > { %512 = vpow2.f32 %v447_v13 }
 0x20e   : > { %514 = vpow2.f32 %v446_v14 }
 0x217   : > { %v513_v15 = vpop.eup %512 }
 0x218   : > { %v515_v16 = vpop.eup %514  ;;  %v348_v17 = vadd.f32 1.0, %v513_v15 }
 0x219   : > { %v347_v18 = vadd.f32 1.0, %v515_v16 }
 0x21a   : > { %516 = vrcp.f32 %v348_v17 }
 0x21b   : > { %518 = vrcp.f32 %v347_v18 }
 0x224   : > { %v517_v19 = vpop.eup %516 }
 0x225   : > { %v519_v20 = vpop.eup %518  ;;  %v355_v21 = vmul.f32 %v517_v19, %v682_v2  ;;  %v356_v22 = vmul.f32 %v517_v19, %v686_v4 }
 0x226   : > { %v353_v23 = vmul.f32 %v519_v20, %v678_v0  ;;  %v354_v24 = vmul.f32 %v519_v20, %v680_v1 }
 0x227   : > { %359 = vst [vmem:[%s245_s21 + $0x10] sm:$0xff] %v355_v21  ;;  %360 = vst [vmem:[%s245_s21 + $0x18] sm:$0xff] %v356_v22 }
 0x228   : > { %357 = vst [vmem:[%s245_s21] sm:$0xff] %v353_v23  ;;  %358 = vst [vmem:[%s245_s21 + $0x8] sm:$0xff] %v354_v24 }
 0x229   : > { %533 = shalt.err (!%p530_p3)
}
 0x22a   : > { %s534_s14 = scalar_lea.hbm %s725_s30, 512  ;;  %s538_s17 = scalar_lea.hbm %s778_s6, 1024 }
 0x22b   : > { %p535_p4 = scmp.ne.s32.totalorder %s725_s30, %s534_s14  ;;  %p539_p9 = scmp.lt.u32.totalorder %s725_s30, %s778_s6 }
 0x22c   : > { %p540_p10 = scmp.lt.u32.totalorder %s538_s17, %s534_s14  ;;  %p542_p12 = scmp.lt.u32.totalorder %s534_s14, %s725_s30 }
 0x22d   : > { %p536_p7 = pnand %p535_p4, %p663_p5 }
 0x22e   : > { %p541_p11 = por %p540_p10, %p539_p9 }
 0x22f   : > { %p537_p8 = pneg %p536_p7 }
 0x230   : > { %p543_p13 = por %p542_p12, %p541_p11 }
 0x232   : > { %p544_p0 = pnand %p543_p13, %p537_p8 }
 0x234   : > { %547 = shalt.err (!%p544_p0)
}
 0x235   : > { %s585_s20 = smov 256   ;;  %s586_s21 = smov 16  }
 0x236   : > { %459 = dma.vmem_to_hbm [thread:$0]  (%p663_p5), %s727_s22, 512, %s725_s30, %s731_s5, %s585_s20, %s585_s20, %s586_s21  }
 0x237 PF: > { %p465_p1 = scmp.ge.s32.totalorder %s582_s26, 2  ;;  %s390_s27 = sand.u32 1, %s570_s23  }
 0x238   : > { %s391_s29 = scalar_lea.sflag [#allocation4], %s390_s27 }
 0x239   : > { %p462_p2 = pnand %p465_p1, %p667_p6 }
 0x23b   : > { %565 = dma.done.wait (!%p462_p2), %s391_s29, 512  }
 0x23c   : > { %567 = vsyncadd (!%p462_p2), %s391_s29, 4294966784  ;;  %p17_p3 = scmp.ge.s32.totalorder %s650_s28, 4   ;;  %s781_s23 = smov %s574_s24 }
 0x23d   : > { %s782_s24 = smov %s578_s25  ;;  %s783_s25 = smov %s661_s7 }
 0x23e   : > { %s784_s26 = smov %s650_s28  ;;  %19 = sbr.rel (!%p17_p3) target bundleno = 5 (0x5), region = 79 }
 0x245   :  { %396 = vsyncpa [#allocation4], 1 }
 0x246   :  { %398 = vsyncpa [#allocation4 + $0x1], 1 }

</bundles_post_ra>
